<compile_context>
chip_gen: v7x
topology: tpu7x:2x2x1
jax: 0.10.0
libtpu: 0.0.40
codegen_flags: <defaults>
</compile_context>

<pallas_src>
import functools

import jax
import jax.numpy as jnp
from jax.experimental import pallas as pl
from jax.experimental.pallas import tpu as pltpu


def _drop_merge_kernel(x_ref, bits_ref, orig_ref, out_ref, *, threshold, scale):
    """x_ref:(1,C1,T)  bits_ref:(1,C1,T) uint32  orig_ref:(1,C2,T)  out_ref:(1,C1+C2,T).

    Inverted dropout on x (keep prob = 1 - p, survivors scaled by 1/(1-p)),
    then channel concat [dropout(x), orig] along axis 1 of the block.
    """
    c1 = x_ref.shape[1]
    x = x_ref[...]
    keep = bits_ref[...] >= jnp.uint32(threshold)          # P(keep) = 1 - p
    dropped = jnp.where(keep, x * jnp.asarray(scale, dtype=x.dtype), 0)
    out_ref[:, :c1, :] = dropped.astype(out_ref.dtype)
    out_ref[:, c1:, :] = orig_ref[...].astype(out_ref.dtype)


def _compiler_params():
    cp = getattr(pltpu, "CompilerParams", None)
    if cp is None:  # older jax releases
        cp = getattr(pltpu, "TPUCompilerParams")
    return cp(dimension_semantics=("parallel", "parallel"))


def _pick_tile_hw(hw, c1, c2, x_bytes, o_bytes, out_bytes, budget=8 * 1024 * 1024):
    """Largest lane tile (multiple of 128, or the full HW axis) whose per-step
    footprint (x + bits + orig + out blocks) stays under `budget` bytes."""
    bytes_per_lane = c1 * (x_bytes + 4) + c2 * o_bytes + (c1 + c2) * out_bytes
    max_lanes = max(128, (budget // max(bytes_per_lane, 1)) // 128 * 128)
    return hw if hw <= max_lanes else max_lanes


def drop_merge(x, x_orig, *, dropout=0.0, training=True, key=None):
    """x:(N,C1,H,W), x_orig:(N,C2,H,W) -> (N,C1+C2,H,W) == cat([dropout(x), x.orig], dim=1)."""
    N, C1, H, W = x.shape
    N2, C2, H2, W2 = x_orig.shape
    assert (N, H, W) == (N2, H2, W2), "batch/spatial dims must match for cat(dim=1)"
    out_dtype = jnp.promote_types(x.dtype, x_orig.dtype)

    # Inference / no-dropout path: plain concat (F.dropout is identity there).
    # XLA's native concat is already at HBM roofline and fuses with the consumer.
    if float(dropout) <= 0.0 or not training:
        return jnp.concatenate([x.astype(out_dtype), x_orig.astype(out_dtype)], axis=1)

    if key is None:
        key = jax.random.PRNGKey(0)

    HW = H * W
    x3 = x.reshape(N, C1, HW)
    o3 = x_orig.reshape(N, C2, HW)
    bits = jax.random.bits(key, (N, C1, HW), dtype=jnp.uint32)

    p = float(dropout)
    threshold = min(int(round(p * 2.0 ** 32)), 2 ** 32 - 1)
    scale = 1.0 / (1.0 - p)

    tile_hw = _pick_tile_hw(
        HW, C1, C2,
        jnp.dtype(x.dtype).itemsize,
        jnp.dtype(x_orig.dtype).itemsize,
        jnp.dtype(out_dtype).itemsize,
    )
    grid = (N, pl.cdiv(HW, tile_hw))

    out = pl.pallas_call(
        functools.partial(_drop_merge_kernel, threshold=threshold, scale=scale),
        out_shape=jax.ShapeDtypeStruct((N, C1 + C2, HW), out_dtype),
        grid=grid,
        in_specs=[
            pl.BlockSpec((1, C1, tile_hw), lambda n, j: (n, 0, j)),          # x
            pl.BlockSpec((1, C1, tile_hw), lambda n, j: (n, 0, j)),          # random bits
            pl.BlockSpec((1, C2, tile_hw), lambda n, j: (n, 0, j)),          # x.orig
        ],
        out_specs=pl.BlockSpec((1, C1 + C2, tile_hw), lambda n, j: (n, 0, j)),
        compiler_params=_compiler_params(),
    )(x3, bits, o3)

    return out.reshape(N, C1 + C2, H, W)


if __name__ == "__main__":
    root = jax.random.PRNGKey(0)
    kx, ko, kdrop = jax.random.split(root, 3)

    N, C, H, W = 2, 4, 16, 16
    x = jax.random.normal(kx, (N, C, H, W), dtype=jnp.float32)        # module input x
    x_orig = jax.random.normal(ko, (N, C, H, W), dtype=jnp.float32)   # x.orig (SequentialEx)

    # Path 1: dropout > 0, training -> dropout(x) then channel concat.
    p = 0.3
    out_drop = jax.block_until_ready(
        drop_merge(x, x_orig, dropout=p, training=True, key=kdrop))
    assert out_drop.shape == (N, 2 * C, H, W)
    # second half of channels must be x.orig untouched
    assert bool(jnp.allclose(out_drop[:, C:], x_orig))
    # dropped elements are 0, kept elements are x * 1/(1-p)
    front = out_drop[:, :C]
    expected = x * (1.0 / (1.0 - p))
    kept = front != 0.0
    assert bool(jnp.allclose(front[kept], expected[kept], atol=1e-5))
    assert bool(jnp.any(kept)) and bool(jnp.any(~kept))

    # Path 2: dropout == 0 -> plain concat [x, x.orig].
    out_plain = jax.block_until_ready(drop_merge(x, x_orig, dropout=0.0))
    assert bool(jnp.allclose(out_plain[:, :C], x))
    assert bool(jnp.allclose(out_plain[:, C:], x_orig))

    # Path 3: dropout > 0 but eval mode -> F.dropout is identity -> plain concat.
    out_eval = jax.block_until_ready(drop_merge(x, x_orig, dropout=p, training=False))
    assert bool(jnp.allclose(out_eval[:, :C], x))
    assert bool(jnp.allclose(out_eval[:, C:], x_orig))

    print("KERNEL_OK")
</pallas_src>

<mosaic_0001>
module attributes {stable_mosaic.version = 11 : i64} {
  func.func @_drop_merge_kernel(%arg0: i32, %arg1: i32, %arg2: memref<1x4x256xf32, #tpu.memory_space<vmem>>, %arg3: memref<1x4x256xi32, #tpu.memory_space<vmem>>, %arg4: memref<1x4x256xf32, #tpu.memory_space<vmem>>, %arg5: memref<1x8x256xf32, #tpu.memory_space<vmem>>) attributes {dimension_semantics = [#tpu.dimension_semantics<parallel>, #tpu.dimension_semantics<parallel>], iteration_bounds = array<i64: 2, 1>, scalar_prefetch = 0 : i64, scratch_operands = 0 : i64, tpu.core_type = #tpu.core_type<tc>, window_params = [{transform_indices = @transform_0, window_bounds = array<i64: 1, 4, 256>}, {transform_indices = @transform_1, window_bounds = array<i64: 1, 4, 256>}, {transform_indices = @transform_2, window_bounds = array<i64: 1, 4, 256>}, {transform_indices = @transform_3, window_bounds = array<i64: 1, 8, 256>}]} {
    %c0 = arith.constant 0 : index
    %c0_0 = arith.constant 0 : index
    %c0_1 = arith.constant 0 : index
    %0 = vector.load %arg2[%c0, %c0_0, %c0_1] : memref<1x4x256xf32, #tpu.memory_space<vmem>>, vector<1x4x256xf32>
    %c0_2 = arith.constant 0 : index
    %c0_3 = arith.constant 0 : index
    %c0_4 = arith.constant 0 : index
    %1 = vector.load %arg3[%c0_2, %c0_3, %c0_4] : memref<1x4x256xi32, #tpu.memory_space<vmem>>, vector<1x4x256xi32>
    %c1288490189_i32 = arith.constant 1288490189 : i32
    %2 = vector.broadcast %c1288490189_i32 : i32 to vector<1x4x256xi32>
    %3 = arith.cmpi uge, %1, %2 : vector<1x4x256xi32>
    %cst = arith.constant 1.42857146 : f32
    %4 = vector.broadcast %cst : f32 to vector<1x4x256xf32>
    %5 = arith.mulf %0, %4 : vector<1x4x256xf32>
    %c0_i32 = arith.constant 0 : i32
    %6 = arith.sitofp %c0_i32 : i32 to f32
    %7 = vector.broadcast %6 : f32 to vector<1x4x256xf32>
    %8 = arith.select %3, %5, %7 : vector<1x4x256xi1>, vector<1x4x256xf32>
    %c0_5 = arith.constant 0 : index
    %c0_6 = arith.constant 0 : index
    %c0_7 = arith.constant 0 : index
    %9 = vector.load %arg5[%c0_5, %c0_6, %c0_7] : memref<1x8x256xf32, #tpu.memory_space<vmem>>, vector<1x4x256xf32>
    tpu.vector_store %arg5[%c0_5, %c0_6, %c0_7], %8 {strides = array<i32>} : memref<1x8x256xf32, #tpu.memory_space<vmem>>, vector<1x4x256xf32>,
    %c0_8 = arith.constant 0 : index
    %c0_9 = arith.constant 0 : index
    %c0_10 = arith.constant 0 : index
    %10 = vector.load %arg4[%c0_8, %c0_9, %c0_10] : memref<1x4x256xf32, #tpu.memory_space<vmem>>, vector<1x4x256xf32>
    %c0_11 = arith.constant 0 : index
    %c4 = arith.constant 4 : index
    %c0_12 = arith.constant 0 : index
    %11 = vector.load %arg5[%c0_11, %c4, %c0_12] : memref<1x8x256xf32, #tpu.memory_space<vmem>>, vector<1x4x256xf32>
    tpu.vector_store %arg5[%c0_11, %c4, %c0_12], %10 {strides = array<i32>} : memref<1x8x256xf32, #tpu.memory_space<vmem>>, vector<1x4x256xf32>,
    return
  }
  func.func @transform_0(%arg0: i32, %arg1: i32) -> (i32, i32, i32) {
    %c0_i32 = arith.constant 0 : i32
    %c0_i32_0 = arith.constant 0 : i32
    return %arg0, %c0_i32, %arg1 : i32, i32, i32
  }
  func.func @transform_1(%arg0: i32, %arg1: i32) -> (i32, i32, i32) {
    %c0_i32 = arith.constant 0 : i32
    %c0_i32_0 = arith.constant 0 : i32
    return %arg0, %c0_i32, %arg1 : i32, i32, i32
  }
  func.func @transform_2(%arg0: i32, %arg1: i32) -> (i32, i32, i32) {
    %c0_i32 = arith.constant 0 : i32
    %c0_i32_0 = arith.constant 0 : i32
    return %arg0, %c0_i32, %arg1 : i32, i32, i32
  }
  func.func @transform_3(%arg0: i32, %arg1: i32) -> (i32, i32, i32) {
    %c0_i32 = arith.constant 0 : i32
    %c0_i32_0 = arith.constant 0 : i32
    return %arg0, %c0_i32, %arg1 : i32, i32, i32
  }
}

</mosaic_0001>

<bundles_post_ra>
// kernel: tpu_custom_call.1
= control target key start
LH: loop header
LB: loop body
LE: loop exit
PB: predicated region body
PF: predicated region fallthrough
CT: control target
= control target key end

     0   :  { %s1017_s0 = inlined_call_operand.hbm [shape: f32[2,4,256], index: 0, kind: input, shape index: {}]   ;;  %s1018_s1 = inlined_call_operand.hbm [shape: u32[2,4,256], index: 1, kind: input, shape index: {}]   ;;  %s1019_s2 = inlined_call_operand.hbm [shape: f32[2,4,256], index: 2, kind: input, shape index: {}]   ;;  %s1020_s3 = inlined_call_operand.hbm [shape: f32[2,8,256], index: 3, kind: output, shape index: {}]  }
   0x1   :  { %1026 = sst [smem:[#allocation15_spill]] %s1018_s1 }
   0x2   :  { %8 = vsyncpa [#allocation3], 0 }
   0x3   :  { %10 = vsyncpa [#allocation3 + $0x1], 0 }
   0x4   :  { %11 = vsyncpa [#allocation6], 0 }
   0x5   :  { %13 = vsyncpa [#allocation6 + $0x1], 0 }
   0x6   :  { %14 = vsyncpa [#allocation4], 0 }
   0x7   :  { %16 = vsyncpa [#allocation4 + $0x1], 0  ;;  %s758_s12 = smov 0   ;;  %s760_s13 = smov 0  }
   0x8   :  { %s762_s14 = smov 0   ;;  %s764_s15 = smov 0  }
   0x9   :  { %s766_s16 = smov 0   ;;  %s768_s17 = smov 0  }
   0xa LB: > { %1027 = sst [smem:[#allocation12_spill]] %s728_s16  ;;  %s789_s18 = sadd.s32 4294967295, %s732_s17   ;;  %s732_s17 = sphi %s768_s17, %s22_s17   ;;  %s728_s16 = sphi %s766_s16, %s1048_s16   ;;  %s724_s15 = sphi %s764_s15, %s1047_s15   ;;  %s720_s14 = sphi %s762_s14, %s1051_s14   ;;  %s716_s13 = sphi %s760_s13, %s1050_s13   ;;  %s712_s12 = sphi %s758_s12, %s1049_s12  }
   0xb   : > { %s457_s19 = sadd.s32 4294967294, %s732_s17   ;;  %s34_s20 = sadd.s32 1, %s728_s16 }
   0xc   : > { %s43_s21 = sadd.s32 1, %s720_s14  ;;  %p36_p0 = scmp.ge.s32.totalorder %s34_s20, 2 }
   0xd   : > { %p50_p1 = scmp.ne.s32.totalorder %s720_s14, %s716_s13  ;;  %p51_p2 = scmp.eq.s32.totalorder %s732_s17, 0 }
   0xe   : > { %p56_p3 = scmp.ne.s32.totalorder %s716_s13, %s712_s12  ;;  %s1053_s20 = smov (%p36_p0, %s34_s20), 0 }
   0xf   : > { %1028 = sst [smem:[#allocation13_spill]] %s1053_s20  ;;  %p801_p4 = por %p51_p2, %p50_p1 }
  0x10   : > { %p57_p5 = scmp.eq.s32.totalorder %s789_s18, 0  ;;  %s38_s23 = ssub.s32 %s728_s16, %s1053_s20 }
  0x11   : > { %p138_p6 = scmp.eq.s32.totalorder %s789_s18, 1  ;;  %p41_p7 = scmp.eq.s32.totalorder %s38_s23, 0 }
  0x12   : > { %p809_p8 = por %p57_p5, %p56_p3  ;;  %p144_p10 = scmp.eq.s32.totalorder %s457_s19, 1 }
  0x13   : > { %p813_p9 = por %p138_p6, %p50_p1  ;;  %p505_p13 = scmp.lt.s32.totalorder %s732_s17, 2 }
  0x14   : > { %s1030_s24 = scalar_select %p809_p8, 1, 0 }
  0x15   : > { %s1031_s25 = scalar_select %p813_p9, 1, 0 }
  0x16   : > { %s818_s26 = scalar_select %p41_p7, %s720_s14, %s43_s21  }
  0x17   : > { %p820_p11 = por %p144_p10, %p56_p3  ;;  %s164_s28 = sand.u32 1, %s720_s14  }
  0x18   : > { %1032 = sst [smem:[#allocation14_spill]] %s818_s26  ;;  %s829_s29 = sshll.u32 %s164_s28, 3 }
  0x19   : > { %s1033_s27 = scalar_select %p820_p11, 1, 0 }
  0x1a   : > { %s832_s30 = sshll.u32 %s728_s16, 7  ;;  %p836_p0 = pnand %p505_p13, %p801_p4 }
  0x1b   : > { %s185_s5 = sand.u32 1, %s732_s17   ;;  %s1035_s1 = sld [smem:[#allocation15_spill]] }
  0x1c   : > { %s1034_s4 = scalar_select %p836_p0, 1, 0 }
  0x1d   : > { %s189_s9 = scalar_lea.vmem [#allocation5], %s829_s29  ;;  %s852_s11 = scalar_lea.sflag [#allocation6], %s185_s5 }
  0x1e   : > { %s199_s10 = sshll.u32 %s189_s9, 4  ;;  %p858_p4 = pneg %p836_p0  ;;  %s849_s10 = int_to_ptr.vmem [resolvable:$true] %s199_s10 }
  0x21   : > { %s845_s8 = scalar_lea.hbm %s1035_s1, %s832_s30  ;;  %s561_s6 = scalar_lea.hbm %s1035_s1, 256 }
  0x22   : > { %s556_s19 = scalar_lea.hbm %s845_s8, 128  ;;  %p562_p7 = scmp.lt.u32.totalorder %s845_s8, %s1035_s1 }
  0x23   : > { %p557_p3 = scmp.ne.s32.totalorder %s845_s8, %s556_s19  ;;  %p563_p10 = scmp.lt.u32.totalorder %s561_s6, %s556_s19 }
  0x24   : > { %p565_p12 = scmp.lt.u32.totalorder %s556_s19, %s845_s8 }
  0x25   : > { %p559_p5 = pnand %p858_p4, %p557_p3  ;;  %p564_p13 = por %p563_p10, %p562_p7 }
  0x27   : > { %p560_p6 = pneg %p559_p5  ;;  %p566_p1 = por %p565_p12, %p564_p13 }
  0x29   : > { %p567_p2 = pnand %p566_p1, %p560_p6 }
  0x2b   : > { %570 = shalt.err (!%p567_p2)
}
  0x2c   : > { %s571_s5 = scalar_lea.vmem %s849_s10, 128  ;;  %s734_s22 = smov [#allocation5]  }
  0x2d   : > { %p572_p3 = scmp.ne.s32.totalorder %s849_s10, %s571_s5  ;;  %s576_s23 = sshll.u32 %s734_s22, 4  ;;  %s577_s23 = int_to_ptr.vmem [resolvable:$false] %s576_s23 }
  0x2e   : > { %s578_s7 = scalar_lea.vmem %s577_s23, 256  ;;  %p579_p9 = scmp.lt.s32.totalorder %s849_s10, %s577_s23 }
  0x2f   : > { %p574_p5 = pnand %p572_p3, %p858_p4  ;;  %p580_p8 = scmp.lt.s32.totalorder %s578_s7, %s571_s5 }
  0x31   : > { %p575_p11 = pneg %p574_p5  ;;  %p581_p7 = por %p580_p8, %p579_p9 }
  0x33   : > { %p582_p10 = pnand %p581_p7, %p575_p11 }
  0x35   : > { %585 = shalt.err (!%p582_p10)
}
  0x36   : > { %497 = dma.hbm_to_vmem [thread:$0]  (!%p836_p0), %s845_s8, 128, %s849_s10, %s852_s11  }
  0x37   : > { %p1037_p12 = scmp.lt.s32.totalorder %s732_s17, 3  ;;  %p1038_p1 = scmp.ge.s32.totalorder %s732_s17, 1 }
  0x38   : > { %s894_s5 = scalar_lea.hbm %s1017_s0, %s832_s30  ;;  %s168_s22 = scalar_lea.vmem [#allocation2], %s829_s29 }
  0x39   : > { %p886_p2 = pnand %p1038_p1, %p1037_p12  ;;  %s178_s23 = sshll.u32 %s168_s22, 4  ;;  %s897_s23 = int_to_ptr.vmem [resolvable:$true] %s178_s23 }
  0x3a   : > { %s903_s7 = scalar_lea.hbm %s1019_s2, %s832_s30  ;;  %s165_s1 = scalar_lea.sflag [#allocation3], %s164_s28 }
  0x3b   : > { %s1039_s19 = scalar_select %p886_p2, 1, 0 }
  0x3c   : > { %s586_s20 = scalar_lea.hbm %s894_s5, 128  ;;  %s591_s16 = scalar_lea.hbm %s1017_s0, 256 }
  0x3d   : > { %p587_p8 = scmp.ne.s32.totalorder %s894_s5, %s586_s20  ;;  %p592_p6 = scmp.lt.u32.totalorder %s894_s5, %s1017_s0 }
  0x3e   : > { %p593_p13 = scmp.lt.u32.totalorder %s591_s16, %s586_s20  ;;  %p595_p5 = scmp.lt.u32.totalorder %s586_s20, %s894_s5 }
  0x3f   : > { %p589_p9 = pnand %p587_p8, %p858_p4 }
  0x40   : > { %p594_p3 = por %p593_p13, %p592_p6 }
  0x41   : > { %p590_p11 = pneg %p589_p9 }
  0x42   : > { %p596_p7 = por %p595_p5, %p594_p3 }
  0x44   : > { %p597_p10 = pnand %p596_p7, %p590_p11 }
  0x46   : > { %600 = shalt.err (!%p597_p10)
}
  0x47   : > { %s601_s28 = scalar_lea.vmem %s897_s23, 128  ;;  %s735_s30 = smov [#allocation2]  }
  0x48   : > { %p602_p12 = scmp.ne.s32.totalorder %s897_s23, %s601_s28  ;;  %s606_s8 = sshll.u32 %s735_s30, 4  ;;  %s607_s8 = int_to_ptr.vmem [resolvable:$false] %s606_s8 }
  0x49   : > { %s608_s26 = scalar_lea.vmem %s607_s8, 256  ;;  %p609_p9 = scmp.lt.s32.totalorder %s897_s23, %s607_s8 }
  0x4a   : > { %p604_p1 = pnand %p602_p12, %p858_p4  ;;  %p610_p2 = scmp.lt.s32.totalorder %s608_s26, %s601_s28 }
  0x4c   : > { %p605_p8 = pneg %p604_p1  ;;  %p611_p6 = por %p610_p2, %p609_p9 }
  0x4e   : > { %p612_p13 = pnand %p611_p6, %p605_p8 }
  0x50   : > { %615 = shalt.err (!%p612_p13)
}
  0x51   : > { %494 = dma.hbm_to_vmem [thread:$0]  (!%p836_p0), %s894_s5, 128, %s897_s23, %s165_s1  }
  0x52   : > { %s210_s16 = scalar_lea.vmem [#allocation7], %s829_s29  ;;  %s616_s10 = scalar_lea.hbm %s903_s7, 128 }
  0x53   : > { %s220_s20 = sshll.u32 %s210_s16, 4  ;;  %p617_p11 = scmp.ne.s32.totalorder %s903_s7, %s616_s10  ;;  %s221_s20 = int_to_ptr.vmem [resolvable:$true] %s220_s20 }
  0x54   : > { %s621_s22 = scalar_lea.hbm %s1019_s2, 256  ;;  %p622_p5 = scmp.lt.u32.totalorder %s903_s7, %s1019_s2 }
  0x55   : > { %p619_p2 = pnand %p617_p11, %p858_p4  ;;  %p623_p7 = scmp.lt.u32.totalorder %s621_s22, %s616_s10 }
  0x56   : > { %p625_p12 = scmp.lt.u32.totalorder %s616_s10, %s903_s7 }
  0x57   : > { %p620_p3 = pneg %p619_p2  ;;  %p624_p10 = por %p623_p7, %p622_p5 }
  0x59   : > { %p626_p1 = por %p625_p12, %p624_p10 }
  0x5b   : > { %p627_p8 = pnand %p626_p1, %p620_p3 }
  0x5d   : > { %630 = shalt.err (!%p627_p8)
}
  0x5e   : > { %s631_s1 = scalar_lea.vmem %s221_s20, 128  ;;  %s736_s29 = smov [#allocation7]  }
  0x5f   : > { %p632_p9 = scmp.ne.s32.totalorder %s221_s20, %s631_s1  ;;  %s636_s5 = sshll.u32 %s736_s29, 4  ;;  %s637_s5 = int_to_ptr.vmem [resolvable:$false] %s636_s5 }
  0x60   : > { %s638_s23 = scalar_lea.vmem %s637_s5, 256  ;;  %p639_p11 = scmp.lt.s32.totalorder %s221_s20, %s637_s5 }
  0x61   : > { %p634_p6 = pnand %p632_p9, %p858_p4  ;;  %p640_p2 = scmp.lt.s32.totalorder %s638_s23, %s631_s1 }
  0x63   : > { %p635_p13 = pneg %p634_p6  ;;  %p641_p0 = por %p640_p2, %p639_p11 }
  0x65   : > { %p642_p5 = pnand %p641_p0, %p635_p13 }
  0x67   : > { %645 = shalt.err (!%p642_p5)
}
  0x68   : > { %p1040_p7 = scmp.ne.s32.totalorder %s1034_s4, 0  ;;  %p1041_p3 = scmp.ne.s32.totalorder %s1039_s19, 0 }
  0x69   : > { %s950_s21 = sand.u32 (!%p1041_p3), 1, %s716_s13   ;;  %p1042_p4 = scmp.ne.s32.totalorder (!%p1041_p3), %s1030_s24, 0 }
  0x6a   : > { %500 = dma.hbm_to_vmem [thread:$0]  (!%p1040_p7), %s903_s7, 128, %s221_s20, %s852_s11  }
  0x6b   : > { %229 = sbr.rel (%p1041_p3) target bundleno = 145 (0x91), region = 32  ;;  %s470_s8 = sshll.u32 (!%p1041_p3), %s950_s21, 3 }
  0x6c   : > { %s232_s26 = scalar_lea.sflag (!%p1041_p3), [#allocation3], %s950_s21  ;;  %s235_s16 = scalar_lea.vmem (!%p1041_p3), [#allocation2], %s470_s8 }
  0x72   : > { %699 = dma.done.wait (%p1042_p4), %s232_s26, 128  }
  0x73   : > { %701 = vsyncadd (%p1042_p4), %s232_s26, 4294967168  ;;  %s240_s4 = sand.u32 1, %s789_s18   ;;  %s244_s19 = scalar_lea.vmem [#allocation5], %s470_s8 }
  0x74   : > { %s241_s11 = scalar_lea.sflag [#allocation6], %s240_s4 }
  0x75   : > { %703 = dma.done.wait (%p1042_p4), %s241_s11, 256  }
  0x76   : > { %705 = vsyncadd (%p1042_p4), %s241_s11, 4294967040  ;;  %s473_s7 = sshll.u32 %s950_s21, 4  ;;  %v290_v0 = vld [vmem:[%s235_s16] sm:$0xff]  ;;  %v291_v1 = vld [vmem:[%s244_s19] sm:$0xff]  ;;  %s253_s20 = scalar_lea.vmem [#allocation7], %s470_s8 }
  0x77   : > { %v300_v2 = vld [vmem:[%s253_s20] sm:$0xff]  ;;  %vm292_vm0 = vcmp.ge.u32.totalorder %v291_v1, 1288490189  ;;  %v293_v3 = vmul.f32 1.4285715, %v290_v0  ;;  %s285_s10 = scalar_lea.vmem [#allocation8], %s473_s7 }
  0x78   : > { %s323_s18 = sshll.u32 %s285_s10, 4  ;;  %v302_v4 = vcombine.low %v300_v2, %v300_v2  ;;  %305 = vst [vmem:[%s285_s10 + $0x8] sm:$0xf0] %v300_v2  ;;  %s482_s6 = sshll.u32 %s724_s15, 8  ;;  %s965_s18 = int_to_ptr.vmem [resolvable:$true] %s323_s18 }
  0x79   : > { %v294_v5 = vsel %vm292_vm0, %v293_v3, 0.0  ;;  %s970_s22 = scalar_lea.hbm %s1020_s3, %s482_s6  ;;  %s307_s28 = scalar_lea.sflag [#allocation4], %s950_s21 }
  0x7a   : > { %304 = vst [vmem:[%s285_s10] sm:$0xf0] %v302_v4  ;;  %v296_v6 = vcombine.high %v294_v5, %v294_v5  ;;  %298 = vst [vmem:[%s285_s10] sm:$0xf] %v294_v5  ;;  %s646_s30 = scalar_lea.vmem %s965_s18, 256  ;;  %p1043_p10 = scmp.ne.s32.totalorder %s1031_s25, 0 }
  0x7b   : > { %p647_p0 = scmp.ne.s32.totalorder %s965_s18, %s646_s30  ;;  %s737_s15 = smov [#allocation8]  }
  0x7c   : > { %299 = vst [vmem:[%s285_s10 + $0x8] sm:$0xf] %v296_v6  ;;  %s650_s1 = sshll.u32 %s737_s15, 4  ;;  %s651_s1 = int_to_ptr.vmem [resolvable:$false] %s650_s1 }
  0x7d   : > { %p648_p12 = pnand %p647_p0, %p1043_p10  ;;  %s652_s29 = scalar_lea.vmem %s651_s1, 512 }
  0x7e   : > { %p653_p8 = scmp.lt.s32.totalorder %s965_s18, %s651_s1  ;;  %p654_p9 = scmp.lt.s32.totalorder %s652_s29, %s646_s30 }
  0x7f   : > { %p649_p1 = pneg %p648_p12 }
  0x80   : > { %p655_p6 = por %p654_p9, %p653_p8 }
  0x82   : > { %p656_p13 = pnand %p655_p6, %p649_p1 }
  0x84   : > { %659 = shalt.err (!%p656_p13)
}
  0x85   : > { %s660_s5 = scalar_lea.hbm %s970_s22, 256  ;;  %s664_s8 = scalar_lea.hbm %s1020_s3, 512 }
  0x86   : > { %p661_p11 = scmp.ne.s32.totalorder %s970_s22, %s660_s5  ;;  %p665_p7 = scmp.lt.u32.totalorder %s970_s22, %s1020_s3 }
  0x87   : > { %p666_p3 = scmp.lt.u32.totalorder %s664_s8, %s660_s5  ;;  %p668_p0 = scmp.lt.u32.totalorder %s660_s5, %s970_s22 }
  0x88   : > { %p662_p2 = pnand %p661_p11, %p1043_p10 }
  0x89   : > { %p667_p4 = por %p666_p3, %p665_p7 }
  0x8a   : > { %p663_p5 = pneg %p662_p2 }
  0x8b   : > { %p669_p12 = por %p668_p0, %p667_p4 }
  0x8d   : > { %p670_p1 = pnand %p669_p12, %p663_p5 }
  0x8f   : > { %673 = shalt.err (!%p670_p1)
}
  0x90   : > { %489 = dma.vmem_to_hbm [thread:$0]  (%p1043_p10), %s965_s18, 256, %s970_s22, %s307_s28  }
  0x91 PF: > { %s335_s4 = sand.u32 1, %s712_s12   ;;  %p1044_p8 = scmp.ne.s32.totalorder %s1033_s27, 0 }
  0x92   : > { %p1045_p9 = scmp.ge.s32.totalorder %s732_s17, 2  ;;  %s336_s11 = scalar_lea.sflag [#allocation4], %s335_s4 }
  0x94   : > { %p502_p6 = pnand %p1045_p9, %p1044_p8 }
  0x96   : > { %707 = dma.done.wait (!%p502_p6), %s336_s11, 256  }
  0x97   : > { %709 = vsyncadd (!%p502_p6), %s336_s11, 4294967040  ;;  %s22_s17 = sadd.s32 1, %s732_s17   ;;  %s1046_s25 = sld [smem:[#allocation14_spill]] }
  0x98   : > { %p19_p13 = scmp.ge.s32.totalorder %s22_s17, 4   ;;  %s1047_s15 = sld [smem:[#allocation12_spill]] }
  0x99   : > { %s1048_s16 = sld [smem:[#allocation13_spill]]  ;;  %s1049_s12 = smov %s716_s13 }
  0x9a   : > { %s1050_s13 = smov %s720_s14  ;;  %21 = sbr.rel (!%p19_p13) target bundleno = 10 (0xa), region = 101 }
  0x9d   : > { %s1051_s14 = smov %s1046_s25 }
  0xa1   :  { %341 = vsyncpa [#allocation3], 1 }
  0xa2   :  { %343 = vsyncpa [#allocation3 + $0x1], 1 }
  0xa3   :  { %344 = vsyncpa [#allocation6], 1 }
  0xa4   :  { %346 = vsyncpa [#allocation6 + $0x1], 1 }
  0xa5   :  { %347 = vsyncpa [#allocation4], 1 }
  0xa6   :  { %349 = vsyncpa [#allocation4 + $0x1], 1 }

</bundles_post_ra>
